<compile_context>
chip_gen: v7x
topology: tpu7x:2x2x1
jax: 0.10.0
libtpu: 0.0.40
codegen_flags: <defaults>
</compile_context>

<pallas_src>
import functools

import jax
import jax.numpy as jnp
from jax.experimental import pallas as pl
from jax.experimental.pallas import tpu as pltpu

LANE = 128  # TPU lane width; Cout / num_classes are zero-padded up to this


# ---------------------------------------------------------------------------
# Fused kernel: conv(im2col matmul) + bias + ReLU + GAP + Linear + CE loss
# ---------------------------------------------------------------------------
def _fused_kernel(labels_ref, patches_ref, cw_ref, cb_ref, fw_ref, fb_ref,
                  loss_ref, logits_ref, feat_s, *, n, hw, num_classes):
    # ---- backbone: conv lowered to one lane-dense 2-D MXU matmul ----
    # patches: (N*HW, 9*Cin)  x  cw: (9*Cin, 128)  ->  (N*HW, 128)
    acc = jnp.dot(patches_ref[...], cw_ref[...],
                  preferred_element_type=jnp.float32)
    acc = jnp.maximum(acc + cb_ref[...], 0.0)            # bias + ReLU

    # ---- global average pool: sublane reduction per image (lane-dense) ----
    inv_hw = 1.0 / hw
    for i in range(n):                                    # n is small & static
        feat_s[i:i + 1, :] = jnp.sum(
            acc[i * hw:(i + 1) * hw, :], axis=0, keepdims=True) * inv_hw

    # ---- classifier: (N, 128) x (128, 128) lane-dense matmul ----
    logits = jnp.dot(feat_s[...], fw_ref[...],
                     preferred_element_type=jnp.float32) + fb_ref[...]
    class_ids = jax.lax.broadcasted_iota(jnp.int32, logits.shape, 1)
    valid = class_ids < num_classes
    logits = jnp.where(valid, logits, -1e30)              # mask padded classes
    logits_ref[...] = logits

    # ---- cross-entropy: stable log-softmax + in-kernel one-hot ----
    m = jnp.max(logits, axis=-1, keepdims=True)
    z = logits - m
    lse = jnp.log(jnp.sum(jnp.exp(z), axis=-1, keepdims=True))
    logp = z - lse                                        # log-softmax
    onehot = class_ids == labels_ref[...]                 # (N,128) vs (N,1)
    nll = -jnp.sum(jnp.where(onehot, logp, 0.0), axis=-1, keepdims=True)  # (N,1)
    loss11 = jnp.sum(nll, axis=0, keepdims=True) * (1.0 / n)              # (1,1)
    loss_ref[...] = jnp.broadcast_to(loss11, loss_ref.shape)  # lane-dense store


# ---------------------------------------------------------------------------
# Host-side glue: im2col, lane padding, pallas_call wrapper
# ---------------------------------------------------------------------------
def _im2col_3x3_flat(x_nhwc):
    """(N, H, W, C) -> (N*H*W, 9*C), pad=1, stride=1, ordering (ky, kx, cin)."""
    n, h, w, c = x_nhwc.shape
    xp = jnp.pad(x_nhwc, ((0, 0), (1, 1), (1, 1), (0, 0)))
    cols = [xp[:, dy:dy + h, dx:dx + w, :] for dy in range(3) for dx in range(3)]
    return jnp.concatenate(cols, axis=-1).reshape(n * h * w, 9 * c)


def _pad_lanes(a, width=LANE):
    """Zero-pad the last dim of `a` up to `width`."""
    return jnp.pad(a, [(0, 0)] * (a.ndim - 1) + [(0, width - a.shape[-1])])


def class_model_apply(x_nchw, labels, params, num_classes):
    """Returns (loss_scalar, logits[N, num_classes]) from one fused Pallas kernel."""
    conv_w, conv_b, fc_w, fc_b = params
    n, cin, h, w = x_nchw.shape
    cout = conv_w.shape[-1]
    hw = h * w

    x_nhwc = jnp.transpose(x_nchw, (0, 2, 3, 1))
    patches = _im2col_3x3_flat(x_nhwc)                    # (N*HW, 9*Cin)

    # Lane-dense (zero-padded) parameters. Padded Cout columns stay exactly zero
    # and padded fc_w rows/cols are zero, so valid logits are bit-identical.
    cw_p = _pad_lanes(conv_w.reshape(9 * cin, cout))      # (9*Cin, 128)
    cb_p = _pad_lanes(conv_b.reshape(1, cout))            # (1, 128)
    fw_p = jnp.zeros((LANE, LANE), jnp.float32).at[:cout, :num_classes].set(fc_w)
    fb_p = _pad_lanes(fc_b.reshape(1, num_classes))       # (1, 128)
    labels2d = labels.reshape(n, 1).astype(jnp.int32)     # (N, 1), no host one-hot

    kernel = functools.partial(_fused_kernel, n=n, hw=hw, num_classes=num_classes)
    loss_row, logits_p = pl.pallas_call(
        kernel,
        out_shape=(jax.ShapeDtypeStruct((1, LANE), jnp.float32),
                   jax.ShapeDtypeStruct((n, LANE), jnp.float32)),
        grid=(1,),
        in_specs=[
            pl.BlockSpec((n, 1), lambda i: (0, 0)),             # labels
            pl.BlockSpec(patches.shape, lambda i: (0, 0)),      # im2col patches
            pl.BlockSpec(cw_p.shape, lambda i: (0, 0)),         # conv weight
            pl.BlockSpec(cb_p.shape, lambda i: (0, 0)),         # conv bias
            pl.BlockSpec(fw_p.shape, lambda i: (0, 0)),         # fc weight
            pl.BlockSpec(fb_p.shape, lambda i: (0, 0)),         # fc bias
        ],
        out_specs=(pl.BlockSpec((1, LANE), lambda i: (0, 0)),   # loss (lane-dense row)
                   pl.BlockSpec((n, LANE), lambda i: (0, 0))),  # logits (lane-dense)
        scratch_shapes=[pltpu.VMEM((n, LANE), jnp.float32)],    # pooled features
        compiler_params=pltpu.CompilerParams(
            dimension_semantics=("arbitrary",)),
    )(labels2d, patches, cw_p, cb_p, fw_p, fb_p)

    return loss_row[0, 0], logits_p[:, :num_classes]


def class_model_forward(data, params, num_classes, is_training=True):
    """Mirrors class_model.forward:
       training: data = (images NCHW, labels) -> scalar loss
       eval:     data = images NCHW           -> logits (pred)
    """
    if is_training:
        x, labels = data[0], data[1]
    else:
        x = data
        labels = jnp.zeros((x.shape[0],), jnp.int32)   # dummy; loss output ignored
    loss, logits = class_model_apply(x, labels, params, num_classes)
    return loss if is_training else logits


# ---------------------------------------------------------------------------
# Main
# ---------------------------------------------------------------------------
if __name__ == "__main__":
    key = jax.random.PRNGKey(0)
    k_x, k_cw, k_cb, k_fw, k_fb, k_lbl = jax.random.split(key, 6)

    N, CIN, H, W = 2, 4, 16, 16
    COUT, NUM_CLASSES = 8, 10

    # deterministic synthetic parameters (not loaded from checkpoint)
    conv_w = jax.random.normal(k_cw, (3, 3, CIN, COUT), dtype=jnp.float32) * 0.1
    conv_b = jax.random.normal(k_cb, (COUT,), dtype=jnp.float32) * 0.1
    fc_w = jax.random.normal(k_fw, (COUT, NUM_CLASSES), dtype=jnp.float32) * 0.1
    fc_b = jax.random.normal(k_fb, (NUM_CLASSES,), dtype=jnp.float32) * 0.1
    params = (conv_w, conv_b, fc_w, fc_b)

    # training-mode input: data = (images NCHW, integer labels)
    x = jax.random.normal(k_x, (N, CIN, H, W), dtype=jnp.float32)
    labels = jax.random.randint(k_lbl, (N,), 0, NUM_CLASSES, dtype=jnp.int32)

    # jit so all host-side prep (im2col, weight padding) is one fused XLA graph
    train_step = jax.jit(
        lambda xx, ll, pp: class_model_forward((xx, ll), pp, NUM_CLASSES,
                                               is_training=True))
    loss = jax.block_until_ready(train_step(x, labels, params))

    # quick sanity: finite scalar
    assert loss.shape == () and bool(jnp.isfinite(loss))
    print("KERNEL_OK")
</pallas_src>

<mosaic_0001>
module attributes {stable_mosaic.version = 11 : i64} {
  func.func @_fused_kernel(%arg0: i32, %arg1: memref<2x1xi32, #tpu.memory_space<vmem>>, %arg2: memref<512x36xf32, #tpu.memory_space<vmem>>, %arg3: memref<36x128xf32, #tpu.memory_space<vmem>>, %arg4: memref<1x128xf32, #tpu.memory_space<vmem>>, %arg5: memref<128x128xf32, #tpu.memory_space<vmem>>, %arg6: memref<1x128xf32, #tpu.memory_space<vmem>>, %arg7: memref<1x128xf32, #tpu.memory_space<vmem>>, %arg8: memref<2x128xf32, #tpu.memory_space<vmem>>, %arg9: memref<2x128xf32, #tpu.memory_space<vmem>>) attributes {dimension_semantics = [#tpu.dimension_semantics<arbitrary>], iteration_bounds = array<i64: 1>, scalar_prefetch = 0 : i64, scratch_operands = 1 : i64, tpu.core_type = #tpu.core_type<tc>, window_params = [{pipeline_mode = #tpu.pipeline_mode<synchronous>, transform_indices = @transform_0, window_bounds = array<i64: 2, 1>}, {pipeline_mode = #tpu.pipeline_mode<synchronous>, transform_indices = @transform_1, window_bounds = array<i64: 512, 36>}, {pipeline_mode = #tpu.pipeline_mode<synchronous>, transform_indices = @transform_2, window_bounds = array<i64: 36, 128>}, {pipeline_mode = #tpu.pipeline_mode<synchronous>, transform_indices = @transform_3, window_bounds = array<i64: 1, 128>}, {pipeline_mode = #tpu.pipeline_mode<synchronous>, transform_indices = @transform_4, window_bounds = array<i64: 128, 128>}, {pipeline_mode = #tpu.pipeline_mode<synchronous>, transform_indices = @transform_5, window_bounds = array<i64: 1, 128>}, {pipeline_mode = #tpu.pipeline_mode<synchronous>, transform_indices = @transform_6, window_bounds = array<i64: 1, 128>}, {pipeline_mode = #tpu.pipeline_mode<synchronous>, transform_indices = @transform_7, window_bounds = array<i64: 2, 128>}]} {
    %c0 = arith.constant 0 : index
    %c0_0 = arith.constant 0 : index
    %0 = vector.load %arg2[%c0, %c0_0] : memref<512x36xf32, #tpu.memory_space<vmem>>, vector<512x36xf32>
    %c0_1 = arith.constant 0 : index
    %c0_2 = arith.constant 0 : index
    %1 = vector.load %arg3[%c0_1, %c0_2] : memref<36x128xf32, #tpu.memory_space<vmem>>, vector<36x128xf32>
    %cst = arith.constant dense<0.000000e+00> : vector<512x128xf32>
    %2 = tpu.matmul %0, %1, %cst {dimension_numbers = #tpu.dot_dimension_numbers<[1], [0], [0], [1], [0, 0, 1, 1], [], []>} : vector<512x36xf32>, vector<36x128xf32>, vector<512x128xf32> -> vector<512x128xf32>
    %c0_3 = arith.constant 0 : index
    %c0_4 = arith.constant 0 : index
    %3 = vector.load %arg4[%c0_3, %c0_4] : memref<1x128xf32, #tpu.memory_space<vmem>>, vector<1x128xf32>
    %4 = vector.broadcast %3 : vector<1x128xf32> to vector<512x128xf32>
    %5 = arith.addf %2, %4 : vector<512x128xf32>
    %cst_5 = arith.constant 0.000000e+00 : f32
    %6 = vector.broadcast %cst_5 : f32 to vector<512x128xf32>
    %7 = arith.maximumf %5, %6 : vector<512x128xf32>
    %8 = vector.extract_strided_slice %7 {offsets = [0, 0], sizes = [256, 128], strides = [1, 1]} : vector<512x128xf32> to vector<256x128xf32>
    %cst_6 = arith.constant dense<0.000000e+00> : vector<128xf32>
    %9 = vector.multi_reduction <add>, %8, %cst_6 [0] : vector<256x128xf32> to vector<128xf32>
    %10 = vector.shape_cast %9 : vector<128xf32> to vector<1x128xf32>
    %cst_7 = arith.constant 3.906250e-03 : f32
    %11 = vector.broadcast %cst_7 : f32 to vector<1x128xf32>
    %12 = arith.mulf %10, %11 : vector<1x128xf32>
    %c0_8 = arith.constant 0 : index
    %c0_9 = arith.constant 0 : index
    %13 = vector.load %arg9[%c0_8, %c0_9] : memref<2x128xf32, #tpu.memory_space<vmem>>, vector<1x128xf32>
    tpu.vector_store %arg9[%c0_8, %c0_9], %12 {strides = array<i32>} : memref<2x128xf32, #tpu.memory_space<vmem>>, vector<1x128xf32>,
    %14 = vector.extract_strided_slice %7 {offsets = [256, 0], sizes = [256, 128], strides = [1, 1]} : vector<512x128xf32> to vector<256x128xf32>
    %cst_10 = arith.constant dense<0.000000e+00> : vector<128xf32>
    %15 = vector.multi_reduction <add>, %14, %cst_10 [0] : vector<256x128xf32> to vector<128xf32>
    %16 = vector.shape_cast %15 : vector<128xf32> to vector<1x128xf32>
    %cst_11 = arith.constant 3.906250e-03 : f32
    %17 = vector.broadcast %cst_11 : f32 to vector<1x128xf32>
    %18 = arith.mulf %16, %17 : vector<1x128xf32>
    %c1 = arith.constant 1 : index
    %c0_12 = arith.constant 0 : index
    %19 = vector.load %arg9[%c1, %c0_12] : memref<2x128xf32, #tpu.memory_space<vmem>>, vector<1x128xf32>
    tpu.vector_store %arg9[%c1, %c0_12], %18 {strides = array<i32>} : memref<2x128xf32, #tpu.memory_space<vmem>>, vector<1x128xf32>,
    %c0_13 = arith.constant 0 : index
    %c0_14 = arith.constant 0 : index
    %20 = vector.load %arg9[%c0_13, %c0_14] : memref<2x128xf32, #tpu.memory_space<vmem>>, vector<2x128xf32>
    %c0_15 = arith.constant 0 : index
    %c0_16 = arith.constant 0 : index
    %21 = vector.load %arg5[%c0_15, %c0_16] : memref<128x128xf32, #tpu.memory_space<vmem>>, vector<128x128xf32>
    %cst_17 = arith.constant dense<0.000000e+00> : vector<2x128xf32>
    %22 = tpu.matmul %20, %21, %cst_17 {dimension_numbers = #tpu.dot_dimension_numbers<[1], [0], [0], [1], [0, 0, 1, 1], [], []>} : vector<2x128xf32>, vector<128x128xf32>, vector<2x128xf32> -> vector<2x128xf32>
    %c0_18 = arith.constant 0 : index
    %c0_19 = arith.constant 0 : index
    %23 = vector.load %arg6[%c0_18, %c0_19] : memref<1x128xf32, #tpu.memory_space<vmem>>, vector<1x128xf32>
    %24 = vector.broadcast %23 : vector<1x128xf32> to vector<2x128xf32>
    %25 = arith.addf %22, %24 : vector<2x128xf32>
    %26 = tpu.iota {dimensions = array<i32: 1>} : vector<2x128xi32>
    %c10_i32 = arith.constant 10 : i32
    %27 = vector.broadcast %c10_i32 : i32 to vector<2x128xi32>
    %28 = arith.cmpi slt, %26, %27 : vector<2x128xi32>
    %cst_20 = arith.constant -1.000000e+30 : f32
    %29 = vector.broadcast %cst_20 : f32 to vector<2x128xf32>
    %30 = arith.select %28, %25, %29 : vector<2x128xi1>, vector<2x128xf32>
    %c0_21 = arith.constant 0 : index
    %c0_22 = arith.constant 0 : index
    %31 = vector.load %arg8[%c0_21, %c0_22] : memref<2x128xf32, #tpu.memory_space<vmem>>, vector<2x128xf32>
    tpu.vector_store %arg8[%c0_21, %c0_22], %30 {strides = array<i32>} : memref<2x128xf32, #tpu.memory_space<vmem>>, vector<2x128xf32>,
    %cst_23 = arith.constant dense<0xFF800000> : vector<2xf32>
    %32 = vector.multi_reduction <maximumf>, %30, %cst_23 [1] : vector<2x128xf32> to vector<2xf32>
    %33 = vector.shape_cast %32 : vector<2xf32> to vector<2x1xf32>
    %34 = vector.broadcast %33 : vector<2x1xf32> to vector<2x128xf32>
    %35 = arith.subf %30, %34 : vector<2x128xf32>
    %36 = math.exp %35 : vector<2x128xf32>
    %cst_24 = arith.constant dense<0.000000e+00> : vector<2xf32>
    %37 = vector.multi_reduction <add>, %36, %cst_24 [1] : vector<2x128xf32> to vector<2xf32>
    %38 = vector.shape_cast %37 : vector<2xf32> to vector<2x1xf32>
    %39 = math.log %38 : vector<2x1xf32>
    %40 = vector.broadcast %39 : vector<2x1xf32> to vector<2x128xf32>
    %41 = arith.subf %35, %40 : vector<2x128xf32>
    %c0_25 = arith.constant 0 : index
    %c0_26 = arith.constant 0 : index
    %42 = vector.load %arg1[%c0_25, %c0_26] : memref<2x1xi32, #tpu.memory_space<vmem>>, vector<2x1xi32>
    %43 = vector.broadcast %42 : vector<2x1xi32> to vector<2x128xi32>
    %44 = arith.cmpi eq, %26, %43 : vector<2x128xi32>
    %cst_27 = arith.constant 0.000000e+00 : f32
    %45 = vector.broadcast %cst_27 : f32 to vector<2x128xf32>
    %46 = arith.select %44, %41, %45 : vector<2x128xi1>, vector<2x128xf32>
    %cst_28 = arith.constant dense<0.000000e+00> : vector<2xf32>
    %47 = vector.multi_reduction <add>, %46, %cst_28 [1] : vector<2x128xf32> to vector<2xf32>
    %48 = vector.shape_cast %47 : vector<2xf32> to vector<2x1xf32>
    %cst_29 = arith.constant 0.000000e+00 : f32
    %49 = vector.broadcast %cst_29 : f32 to vector<2x1xf32>
    %50 = arith.subf %49, %48 : vector<2x1xf32>
    %cst_30 = arith.constant dense<0.000000e+00> : vector<1xf32>
    %51 = vector.multi_reduction <add>, %50, %cst_30 [0] : vector<2x1xf32> to vector<1xf32>
    %52 = vector.shape_cast %51 : vector<1xf32> to vector<1x1xf32>
    %cst_31 = arith.constant 5.000000e-01 : f32
    %53 = vector.broadcast %cst_31 : f32 to vector<1x1xf32>
    %54 = arith.mulf %52, %53 : vector<1x1xf32>
    %55 = vector.shape_cast %54 : vector<1x1xf32> to vector<1x1xf32>
    %56 = vector.broadcast %55 : vector<1x1xf32> to vector<1x128xf32>
    %c0_32 = arith.constant 0 : index
    %c0_33 = arith.constant 0 : index
    %57 = vector.load %arg7[%c0_32, %c0_33] : memref<1x128xf32, #tpu.memory_space<vmem>>, vector<1x128xf32>
    tpu.vector_store %arg7[%c0_32, %c0_33], %56 {strides = array<i32>} : memref<1x128xf32, #tpu.memory_space<vmem>>, vector<1x128xf32>,
    return
  }
  func.func @transform_0(%arg0: i32) -> (i32, i32) {
    %c0_i32 = arith.constant 0 : i32
    %c0_i32_0 = arith.constant 0 : i32
    %c0_i32_1 = arith.constant 0 : i32
    return %c0_i32, %c0_i32_0 : i32, i32
  }
  func.func @transform_1(%arg0: i32) -> (i32, i32) {
    %c0_i32 = arith.constant 0 : i32
    %c0_i32_0 = arith.constant 0 : i32
    %c0_i32_1 = arith.constant 0 : i32
    return %c0_i32, %c0_i32_0 : i32, i32
  }
  func.func @transform_2(%arg0: i32) -> (i32, i32) {
    %c0_i32 = arith.constant 0 : i32
    %c0_i32_0 = arith.constant 0 : i32
    %c0_i32_1 = arith.constant 0 : i32
    return %c0_i32, %c0_i32_0 : i32, i32
  }
  func.func @transform_3(%arg0: i32) -> (i32, i32) {
    %c0_i32 = arith.constant 0 : i32
    %c0_i32_0 = arith.constant 0 : i32
    %c0_i32_1 = arith.constant 0 : i32
    return %c0_i32, %c0_i32_0 : i32, i32
  }
  func.func @transform_4(%arg0: i32) -> (i32, i32) {
    %c0_i32 = arith.constant 0 : i32
    %c0_i32_0 = arith.constant 0 : i32
    %c0_i32_1 = arith.constant 0 : i32
    return %c0_i32, %c0_i32_0 : i32, i32
  }
  func.func @transform_5(%arg0: i32) -> (i32, i32) {
    %c0_i32 = arith.constant 0 : i32
    %c0_i32_0 = arith.constant 0 : i32
    %c0_i32_1 = arith.constant 0 : i32
    return %c0_i32, %c0_i32_0 : i32, i32
  }
  func.func @transform_6(%arg0: i32) -> (i32, i32) {
    %c0_i32 = arith.constant 0 : i32
    %c0_i32_0 = arith.constant 0 : i32
    %c0_i32_1 = arith.constant 0 : i32
    return %c0_i32, %c0_i32_0 : i32, i32
  }
  func.func @transform_7(%arg0: i32) -> (i32, i32) {
    %c0_i32 = arith.constant 0 : i32
    %c0_i32_0 = arith.constant 0 : i32
    %c0_i32_1 = arith.constant 0 : i32
    return %c0_i32, %c0_i32_0 : i32, i32
  }
}

</mosaic_0001>

<bundles_post_ra>
// kernel: _lambda_.1
= control target key start
LH: loop header
LB: loop body
LE: loop exit
PB: predicated region body
PF: predicated region fallthrough
CT: control target
= control target key end

     0   :  { %13 = vsyncpa [#allocation4], 0  ;;  %vm103_vm0 = vcmask 293888   ;;  %vm296_vm1 = vcmask 1043456   ;;  %s1944_s0 = inlined_call_operand.vmem [shape: s32[2,1], index: 0, kind: input, shape index: {}]   ;;  %s1945_s1 = inlined_call_operand.vmem [shape: f32[512,36], index: 1, kind: input, shape index: {}]   ;;  %s1946_s2 = inlined_call_operand.vmem [shape: f32[36,128], index: 2, kind: input, shape index: {}]   ;;  %s1947_s3 = inlined_call_operand.vmem [shape: f32[1,128], index: 3, kind: input, shape index: {}]   ;;  %s1948_s4 = inlined_call_operand.vmem [shape: f32[128,128], index: 4, kind: input, shape index: {}]   ;;  %s1949_s5 = inlined_call_operand.vmem [shape: f32[1,128], index: 5, kind: input, shape index: {}]   ;;  %s1950_s6 = inlined_call_operand.hbm [shape: f32[1,128], index: 6, kind: output, shape index: {0}]   ;;  %s1951_s7 = inlined_call_operand.hbm [shape: f32[2,128], index: 7, kind: output, shape index: {1}]  }
   0x1   :  { %v91_v0 = vld [vmem:[%s1946_s2] sm:$0xff]  ;;  %v92_v1 = vld [vmem:[%s1946_s2 + $0x8] sm:$0xff]  ;;  %v93_v2 = vld [vmem:[%s1946_s2 + $0x10] sm:$0xff] }
   0x2   :  { %v1280_v3 = vpack.c.bf16 %v92_v1, %v91_v0  ;;  %v94_v4 = vld [vmem:[%s1946_s2 + $0x18] sm:$0xff]  ;;  %v27_v5 = vld [vmem:[%s1945_s1] sm:$0xff]  ;;  %v28_v8 = vld [vmem:[%s1945_s1 + $0x8] sm:$0xff] }
   0x3   :  { %v1284_v6 = vpack.c.bf16 %v94_v4, %v93_v2  ;;  %1149 = vmatprep.mubr.msk.f32.mxu0 %vm103_vm0, %v27_v5  ;;  %v95_v7 = vld [vmem:[%s1946_s2 + $0x20] sm:$0xf]  ;;  %v29_v9 = vld [vmem:[%s1945_s1 + $0x10] sm:$0xff]  ;;  %v62_v11 = vld [vmem:[%s1945_s1 + $0x118] sm:$0xff] }
   0x4   :  { %1281 = vmatprep.subr.bf16.mxu0 %v1280_v3  ;;  %1312 = vmatprep.subr.bf16.mxu1 %v1280_v3  ;;  %v61_v10 = vld [vmem:[%s1945_s1 + $0x110] sm:$0xff]  ;;  %v63_v12 = vld [vmem:[%s1945_s1 + $0x120] sm:$0xff]  ;;  %v30_v13 = vld [vmem:[%s1945_s1 + $0x18] sm:$0xff] }
   0x5   :  { %1283 = vmatpush3.bf16.msra.mxu0 %v1280_v3  ;;  %1315 = vmatpush3.bf16.msra.mxu1 %v1280_v3  ;;  %v31_v14 = vld [vmem:[%s1945_s1 + $0x20] sm:$0xff]  ;;  %v64_v15 = vld [vmem:[%s1945_s1 + $0x128] sm:$0xff]  ;;  %v65_v16 = vld [vmem:[%s1945_s1 + $0x130] sm:$0xff] }
   0x6   :  { %1285 = vmatprep.subr.bf16.mxu0 %v1284_v6  ;;  %1313 = vmatprep.subr.bf16.mxu1 %v1284_v6  ;;  %v32_v17 = vld [vmem:[%s1945_s1 + $0x28] sm:$0xff]  ;;  %v33_v18 = vld [vmem:[%s1945_s1 + $0x30] sm:$0xff]  ;;  %v66_v19 = vld [vmem:[%s1945_s1 + $0x138] sm:$0xff] }
   0x7   :  { %1200 = vmatprep.mubr.msk.f32.mxu1 %vm103_vm0, %v61_v10  ;;  %v67_v20 = vld [vmem:[%s1945_s1 + $0x140] sm:$0xff]  ;;  %v34_v21 = vld [vmem:[%s1945_s1 + $0x38] sm:$0xff] }
   0x8   :  { %v35_v22 = vld [vmem:[%s1945_s1 + $0x40] sm:$0xff] }
   0x9   :  { %1287 = vmatpush3.bf16.msra.mxu0 %v1284_v6  ;;  %1316 = vmatpush3.bf16.msra.mxu1 %v1284_v6 }
   0xa   :  { %1147 = vmatprep.subr.msk.mxu0 %vm296_vm1, %v95_v7  ;;  %1314 = vmatprep.subr.msk.mxu1 %vm296_vm1, %v95_v7 }
   0xd   :  { %1148 = vmatpush3.msk.msra.mxu0 %vm296_vm1, %v95_v7  ;;  %1317 = vmatpush3.msk.msra.mxu1 %vm296_vm1, %v95_v7 }
   0xe   :  { %1150 = vmatmul.mubr.msk.f32.vlgmr.msra.gmra.mrb[0].mxu0 %vm103_vm0, %v28_v8  ;;  %1201 = vmatmul.mubr.msk.f32.vlgmr.msra.gmra.mrb[0].mxu1 %vm103_vm0, %v62_v11 }
   0xf   :  { %1152 = vmatprep.mubr.msk.f32.mxu0 %vm103_vm0, %v29_v9  ;;  %1203 = vmatprep.mubr.msk.f32.mxu1 %vm103_vm0, %v63_v12 }
  0x12   :  { %1153 = vmatmul.mubr.msk.f32.gmra.mrb[2].mxu0 %vm103_vm0, %v30_v13  ;;  %1204 = vmatmul.mubr.msk.f32.gmra.mrb[2].mxu1 %vm103_vm0, %v64_v15 }
  0x13   :  { %1155 = vmatprep.mubr.msk.f32.mxu0 %vm103_vm0, %v31_v14  ;;  %1206 = vmatprep.mubr.msk.f32.mxu1 %vm103_vm0, %v65_v16 }
  0x16   :  { %1156 = vmatmul.mubr.msk.f32.gmra.mrb[4].mxu0 %vm103_vm0, %v32_v17  ;;  %1207 = vmatmul.mubr.msk.f32.gmra.mrb[4].mxu1 %vm103_vm0, %v66_v19 }
  0x17   :  { %1158 = vmatprep.mubr.msk.f32.mxu0 %vm103_vm0, %v33_v18 }
  0x18   :  { %14 = vsyncpa [#allocation6], 0  ;;  %1209 = vmatprep.mubr.msk.f32.mxu1 %vm103_vm0, %v67_v20  ;;  %v68_v23 = vld [vmem:[%s1945_s1 + $0x148] sm:$0xff]  ;;  %v69_v24 = vld [vmem:[%s1945_s1 + $0x150] sm:$0xff]  ;;  %v1378_v7 = vmov 0.0|0.0   ;;  %vm1379_vm2 = vmmov 0  }
  0x19   :  { %v36_v25 = vld [vmem:[%s1945_s1 + $0x48] sm:$0xff]  ;;  %v37_v26 = vld [vmem:[%s1945_s1 + $0x50] sm:$0xff]  ;;  %v70_v27 = vld [vmem:[%s1945_s1 + $0x158] sm:$0xff]  ;;  %1288 = vmatprep.subr.bf16.mxu1 %v1378_v7  ;;  %vm926_vm4 = vcmask 1041408  }
  0x1a   :  { %1159 = vmatmul.mubr.msk.f32.gmra.mrb[6].mxu0 %vm103_vm0, %v34_v21  ;;  %1210 = vmatmul.mubr.msk.f32.gmra.mrb[6].mxu1 %vm103_vm0, %v68_v23  ;;  %v71_v28 = vld [vmem:[%s1945_s1 + $0x160] sm:$0xff]  ;;  %v38_v29 = vld [vmem:[%s1945_s1 + $0x58] sm:$0xff]  ;;  %v72_v31 = vld [vmem:[%s1945_s1 + $0x168] sm:$0xff] }
  0x1b   :  { %1161 = vmatprep.mubr.msk.f32.mxu0 %vm103_vm0, %v35_v22  ;;  %1212 = vmatprep.mubr.msk.f32.mxu1 %vm103_vm0, %v69_v24  ;;  %v39_v30 = vld [vmem:[%s1945_s1 + $0x60] sm:$0xff]  ;;  %v73_v32 = vld [vmem:[%s1945_s1 + $0x170] sm:$0xff]  ;;  %v40_v33 = vld [vmem:[%s1945_s1 + $0x68] sm:$0xff] }
  0x1c   :  { %v41_v34 = vld [vmem:[%s1945_s1 + $0x70] sm:$0xff]  ;;  %v74_v35 = vld [vmem:[%s1945_s1 + $0x178] sm:$0xff]  ;;  %v75_v36 = vld [vmem:[%s1945_s1 + $0x180] sm:$0xff] }
  0x1d   :  { %v42_v37 = vld [vmem:[%s1945_s1 + $0x78] sm:$0xff]  ;;  %v43_v38 = vld [vmem:[%s1945_s1 + $0x80] sm:$0xff]  ;;  %v76_v39 = vld [vmem:[%s1945_s1 + $0x188] sm:$0xff] }
  0x1e   :  { %1162 = vmatmul.mubr.msk.f32.gmra.mrb[8].mxu0 %vm103_vm0, %v36_v25  ;;  %1213 = vmatmul.mubr.msk.f32.gmra.mrb[8].mxu1 %vm103_vm0, %v70_v27  ;;  %v77_v40 = vld [vmem:[%s1945_s1 + $0x190] sm:$0xff]  ;;  %v44_v41 = vld [vmem:[%s1945_s1 + $0x88] sm:$0xff]  ;;  %v78_v43 = vld [vmem:[%s1945_s1 + $0x198] sm:$0xff] }
  0x1f   :  { %1164 = vmatprep.mubr.msk.f32.mxu0 %vm103_vm0, %v37_v26  ;;  %1215 = vmatprep.mubr.msk.f32.mxu1 %vm103_vm0, %v71_v28  ;;  %v45_v42 = vld [vmem:[%s1945_s1 + $0x90] sm:$0xff]  ;;  %v79_v44 = vld [vmem:[%s1945_s1 + $0x1a0] sm:$0xff]  ;;  %v46_v45 = vld [vmem:[%s1945_s1 + $0x98] sm:$0xff] }
  0x20   :  { %v47_v46 = vld [vmem:[%s1945_s1 + $0xa0] sm:$0xff]  ;;  %v80_v47 = vld [vmem:[%s1945_s1 + $0x1a8] sm:$0xff]  ;;  %v81_v48 = vld [vmem:[%s1945_s1 + $0x1b0] sm:$0xff] }
  0x21   :  { %v48_v49 = vld [vmem:[%s1945_s1 + $0xa8] sm:$0xff]  ;;  %v49_v50 = vld [vmem:[%s1945_s1 + $0xb0] sm:$0xff]  ;;  %v82_v51 = vld [vmem:[%s1945_s1 + $0x1b8] sm:$0xff] }
  0x22   :  { %1165 = vmatmul.mubr.msk.f32.gmra.mrb[10].mxu0 %vm103_vm0, %v38_v29  ;;  %1216 = vmatmul.mubr.msk.f32.gmra.mrb[10].mxu1 %vm103_vm0, %v72_v31  ;;  %v83_v52 = vld [vmem:[%s1945_s1 + $0x1c0] sm:$0xff]  ;;  %v50_v53 = vld [vmem:[%s1945_s1 + $0xb8] sm:$0xff]  ;;  %v84_v55 = vld [vmem:[%s1945_s1 + $0x1c8] sm:$0xff] }
  0x23   :  { %1167 = vmatprep.mubr.msk.f32.mxu0 %vm103_vm0, %v39_v30  ;;  %1218 = vmatprep.mubr.msk.f32.mxu1 %vm103_vm0, %v73_v32  ;;  %v51_v54 = vld [vmem:[%s1945_s1 + $0xc0] sm:$0xff]  ;;  %v85_v56 = vld [vmem:[%s1945_s1 + $0x1d0] sm:$0xff]  ;;  %v52_v57 = vld [vmem:[%s1945_s1 + $0xc8] sm:$0xff] }
  0x24   :  { %v53_v58 = vld [vmem:[%s1945_s1 + $0xd0] sm:$0xff]  ;;  %v86_v59 = vld [vmem:[%s1945_s1 + $0x1d8] sm:$0xff]  ;;  %v87_v60 = vld [vmem:[%s1945_s1 + $0x1e0] sm:$0xff] }
  0x25   :  { %v54_v61 = vld [vmem:[%s1945_s1 + $0xd8] sm:$0xff]  ;;  %v55_v62 = vld [vmem:[%s1945_s1 + $0xe0] sm:$0xff]  ;;  %v88_v63 = vld [vmem:[%s1945_s1 + $0x1e8] sm:$0xff] }
  0x26   :  { %1168 = vmatmul.mubr.msk.f32.gmra.mrb[12].mxu0 %vm103_vm0, %v40_v33  ;;  %1219 = vmatmul.mubr.msk.f32.gmra.mrb[12].mxu1 %vm103_vm0, %v74_v35  ;;  %v89_v0 = vld [vmem:[%s1945_s1 + $0x1f0] sm:$0xff]  ;;  %v56_v1 = vld [vmem:[%s1945_s1 + $0xe8] sm:$0xff]  ;;  %v90_v3 = vld [vmem:[%s1945_s1 + $0x1f8] sm:$0xff] }
  0x27   :  { %1170 = vmatprep.mubr.msk.f32.mxu0 %vm103_vm0, %v41_v34  ;;  %1221 = vmatprep.mubr.msk.f32.mxu1 %vm103_vm0, %v75_v36  ;;  %v57_v2 = vld [vmem:[%s1945_s1 + $0xf0] sm:$0xff]  ;;  %v58_v4 = vld [vmem:[%s1945_s1 + $0xf8] sm:$0xff]  ;;  %v59_v5 = vld [vmem:[%s1945_s1 + $0x100] sm:$0xff] }
  0x28   :  { %v60_v6 = vld [vmem:[%s1945_s1 + $0x108] sm:$0xff]  ;;  %v828_v8 = vld [vmem:[%s1948_s4] sm:$0xff]  ;;  %v830_v11 = vld [vmem:[%s1948_s4 + $0x10] sm:$0xff] }
  0x29   :  { %v829_v9 = vld [vmem:[%s1948_s4 + $0x8] sm:$0xff]  ;;  %v831_v12 = vld [vmem:[%s1948_s4 + $0x18] sm:$0xff]  ;;  %v832_v14 = vld [vmem:[%s1948_s4 + $0x20] sm:$0xff] }
  0x2a   :  { %1171 = vmatmul.mubr.msk.f32.gmra.mrb[14].mxu0 %vm103_vm0, %v42_v37  ;;  %1222 = vmatmul.mubr.msk.f32.gmra.mrb[14].mxu1 %vm103_vm0, %v76_v39  ;;  %v1289_v10 = vpack.c.bf16 %v829_v9, %v828_v8  ;;  %v1292_v13 = vpack.c.bf16 %v831_v12, %v830_v11  ;;  %v833_v15 = vld [vmem:[%s1948_s4 + $0x28] sm:$0xff]  ;;  %v834_v17 = vld [vmem:[%s1948_s4 + $0x30] sm:$0xff]  ;;  %v835_v18 = vld [vmem:[%s1948_s4 + $0x38] sm:$0xff] }
  0x2b   :  { %1173 = vmatprep.mubr.msk.f32.mxu0 %vm103_vm0, %v43_v38  ;;  %1224 = vmatprep.mubr.msk.f32.mxu1 %vm103_vm0, %v77_v40  ;;  %v1295_v16 = vpack.c.bf16 %v833_v15, %v832_v14  ;;  %v1298_v19 = vpack.c.bf16 %v835_v18, %v834_v17  ;;  %v1727_v20 = vld [vmem:[%s1947_s3] ss:$0 sm:$0xff]  ;;  %v837_v39 = vld [vmem:[%s1948_s4 + $0x48] sm:$0xff]  ;;  %v843_v11 = vld [vmem:[%s1948_s4 + $0x78] sm:$0xff]  ;;  %v1380_v17 = vmov 0.0  }
  0x2c   :  { %1290 = vmatpush3.bf16.msra.mxu1 %v1289_v10  ;;  %v836_v38 = vld [vmem:[%s1948_s4 + $0x40] sm:$0xff]  ;;  %v842_v10 = vld [vmem:[%s1948_s4 + $0x70] sm:$0xff] }
  0x2d   :  { %1291 = vmatprep.subr.bf16.mxu1 %v1378_v7 }
  0x2e   :  { %1174 = vmatmul.mubr.msk.f32.gmra.mrb[16].mxu0 %vm103_vm0, %v44_v41  ;;  %1225 = vmatmul.mubr.msk.f32.gmra.mrb[16].mxu1 %vm103_vm0, %v78_v43  ;;  %v1301_v41 = vpack.c.bf16 %v837_v39, %v836_v38 }
  0x2f   :  { %1176 = vmatprep.mubr.msk.f32.mxu0 %vm103_vm0, %v45_v42  ;;  %1227 = vmatprep.mubr.msk.f32.mxu1 %vm103_vm0, %v79_v44 }
  0x30   :  { %1293 = vmatpush3.bf16.msra.mxu1 %v1292_v13  ;;  %v1310_v13 = vpack.c.bf16 %v843_v11, %v842_v10 }
  0x31   :  { %1294 = vmatprep.subr.bf16.mxu1 %v1378_v7 }
  0x32   :  { %1177 = vmatmul.mubr.msk.f32.gmra.mrb[18].mxu0 %vm103_vm0, %v46_v45  ;;  %1228 = vmatmul.mubr.msk.f32.gmra.mrb[18].mxu1 %vm103_vm0, %v80_v47 }
  0x33   :  { %1179 = vmatprep.mubr.msk.f32.mxu0 %vm103_vm0, %v47_v46  ;;  %1230 = vmatprep.mubr.msk.f32.mxu1 %vm103_vm0, %v81_v48 }
  0x34   :  { %1296 = vmatpush3.bf16.msra.mxu1 %v1295_v16 }
  0x35   :  { %1297 = vmatprep.subr.bf16.mxu1 %v1378_v7 }
  0x36   :  { %1180 = vmatmul.mubr.msk.f32.gmra.mrb[20].mxu0 %vm103_vm0, %v48_v49  ;;  %1231 = vmatmul.mubr.msk.f32.gmra.mrb[20].mxu1 %vm103_vm0, %v82_v51  ;;  %v838_v51 = vld [vmem:[%s1948_s4 + $0x50] sm:$0xff] }
  0x37   :  { %1182 = vmatprep.mubr.msk.f32.mxu0 %vm103_vm0, %v49_v50  ;;  %1233 = vmatprep.mubr.msk.f32.mxu1 %vm103_vm0, %v83_v52  ;;  %v839_v52 = vld [vmem:[%s1948_s4 + $0x58] sm:$0xff] }
  0x38   :  { %1299 = vmatpush3.bf16.msra.mxu1 %v1298_v19 }
  0x39   :  { %1300 = vmatprep.subr.bf16.mxu1 %v1378_v7 }
  0x3a   :  { %1183 = vmatmul.mubr.msk.f32.gmra.mrb[22].mxu0 %vm103_vm0, %v50_v53  ;;  %1234 = vmatmul.mubr.msk.f32.gmra.mrb[22].mxu1 %vm103_vm0, %v84_v55  ;;  %v1304_v55 = vpack.c.bf16 %v839_v52, %v838_v51 }
  0x3b   :  { %1185 = vmatprep.mubr.msk.f32.mxu0 %vm103_vm0, %v51_v54  ;;  %1236 = vmatprep.mubr.msk.f32.mxu1 %vm103_vm0, %v85_v56 }
  0x3c   :  { %1302 = vmatpush3.bf16.msra.mxu1 %v1301_v41 }
  0x3d   :  { %1303 = vmatprep.subr.bf16.mxu1 %v1378_v7 }
  0x3e   :  { %1186 = vmatmul.mubr.msk.f32.gmra.mrb[24].mxu0 %vm103_vm0, %v52_v57  ;;  %1237 = vmatmul.mubr.msk.f32.gmra.mrb[24].mxu1 %vm103_vm0, %v86_v59 }
  0x3f   :  { %1188 = vmatprep.mubr.msk.f32.mxu0 %vm103_vm0, %v53_v58  ;;  %1239 = vmatprep.mubr.msk.f32.mxu1 %vm103_vm0, %v87_v60 }
  0x40   :  { %1305 = vmatpush3.bf16.msra.mxu1 %v1304_v55 }
  0x41   :  { %1306 = vmatprep.subr.bf16.mxu1 %v1378_v7 }
  0x42   :  { %1189 = vmatmul.mubr.msk.f32.gmra.mrb[26].mxu0 %vm103_vm0, %v54_v61  ;;  %1240 = vmatmul.mubr.msk.f32.gmra.mrb[26].mxu1 %vm103_vm0, %v88_v63 }
  0x43   :  { %1191 = vmatprep.mubr.msk.f32.mxu0 %vm103_vm0, %v55_v62  ;;  %1242 = vmatprep.mubr.msk.f32.mxu1 %vm103_vm0, %v89_v0  ;;  %v840_v0 = vld [vmem:[%s1948_s4 + $0x60] sm:$0xff] }
  0x46   :  { %1192 = vmatmul.mubr.msk.f32.gmra.mrb[28].mxu0 %vm103_vm0, %v56_v1  ;;  %1243 = vmatmul.mubr.msk.f32.gmra.mrb[28].mxu1 %vm103_vm0, %v90_v3  ;;  %v841_v1 = vld [vmem:[%s1948_s4 + $0x68] sm:$0xff] }
  0x47   :  { %1194 = vmatprep.mubr.msk.f32.mxu0 %vm103_vm0, %v57_v2  ;;  %1277 = vmatprep.mubr.msk.f32.mxu1 %vm1379_vm2, %v1380_v17 }
  0x4a   :  { %1195 = vmatmul.mubr.msk.f32.gmra.mrb[30].mxu0 %vm103_vm0, %v58_v4  ;;  %v1307_v4 = vpack.c.bf16 %v841_v1, %v840_v0 }
  0x4b   :  { %1197 = vmatprep.mubr.msk.f32.mxu0 %vm103_vm0, %v59_v5 }
  0x4c   :  { %1308 = vmatpush3.bf16.msra.mxu1 %v1307_v4 }
  0x4d   :  { %1309 = vmatprep.subr.bf16.mxu1 %v1378_v7 }
  0x4e   :  { %1198 = vmatmul.mubr.msk.f32.gmra.mrb[32].mxu0 %vm103_vm0, %v60_v6 }
  0x50   :  { %1311 = vmatpush3.bf16.msra.mxu1 %v1310_v13 }
  0xe1   :  { %v1151_v21 = vpop.f32.mrb[0].mxu0  ;;  %v1731_v25 = vpop.f32.mrb[0].mxu1 }
  0xe2   :  { %v372_v22 = vadd.f32 %v1151_v21, %v1727_v20  ;;  %v366_v23 = vpop.f32.mrb[1].mxu0  ;;  %v1733_v27 = vpop.f32.mrb[1].mxu1 }
  0xe3   :  { %v367_v24 = vadd.f32 %v1727_v20, %v366_v23 }
  0xe4   :  { %v686_v26 = vmax.f32 %v372_v22, 0.0 }
  0xe5   :  { %v685_v28 = vmax.f32 %v367_v24, 0.0  ;;  %v1154_v29 = vpop.f32.mrb[2].mxu0  ;;  %v1737_v34 = vpop.f32.mrb[2].mxu1 }
  0xe6   :  { %v376_v30 = vpop.f32.mrb[3].mxu0  ;;  %v382_v32 = vadd.f32 %v1154_v29, %v1727_v20  ;;  %v1739_v35 = vpop.f32.mrb[3].mxu1 }
  0xe7   :  { %v749_v31 = vadd.f32 %v686_v26, %v685_v28  ;;  %v377_v33 = vadd.f32 %v1727_v20, %v376_v30 }
  0xe8   :  { %v688_v42 = vmax.f32 %v382_v32, 0.0 }
  0xe9   :  { %v687_v36 = vmax.f32 %v377_v33, 0.0  ;;  %v1157_v37 = vpop.f32.mrb[4].mxu0  ;;  %v1749_v46 = vpop.f32.mrb[4].mxu1 }
  0xea   :  { %v386_v40 = vpop.f32.mrb[5].mxu0  ;;  %v392_v44 = vadd.f32 %v1157_v37, %v1727_v20  ;;  %v1751_v47 = vpop.f32.mrb[5].mxu1 }
  0xeb   :  { %v750_v43 = vadd.f32 %v749_v31, %v687_v36  ;;  %v387_v45 = vadd.f32 %v1727_v20, %v386_v40 }
  0xec   :  { %v690_v56 = vmax.f32 %v392_v44, 0.0 }
  0xed   :  { %v689_v48 = vmax.f32 %v387_v45, 0.0  ;;  %v751_v49 = vadd.f32 %v750_v43, %v688_v42  ;;  %v1160_v50 = vpop.f32.mrb[6].mxu0  ;;  %v1762_v59 = vpop.f32.mrb[6].mxu1 }
  0xee   :  { %v402_v53 = vadd.f32 %v1160_v50, %v1727_v20  ;;  %v396_v54 = vpop.f32.mrb[7].mxu0  ;;  %v1764_v60 = vpop.f32.mrb[7].mxu1 }
  0xef   :  { %v752_v57 = vadd.f32 %v751_v49, %v689_v48  ;;  %v397_v58 = vadd.f32 %v1727_v20, %v396_v54 }
  0xf0   :  { %v692_v2 = vmax.f32 %v402_v53, 0.0 }
  0xf1   :  { %v691_v61 = vmax.f32 %v397_v58, 0.0  ;;  %v753_v62 = vadd.f32 %v752_v57, %v690_v56  ;;  %v1163_v63 = vpop.f32.mrb[8].mxu0  ;;  %v1775_v9 = vpop.f32.mrb[8].mxu1 }
  0xf2   :  { %v406_v3 = vpop.f32.mrb[9].mxu0  ;;  %v412_v6 = vadd.f32 %v1163_v63, %v1727_v20  ;;  %v1783_v12 = vpop.f32.mrb[9].mxu1 }
  0xf3   :  { %v754_v5 = vadd.f32 %v753_v62, %v691_v61  ;;  %v407_v8 = vadd.f32 %v1727_v20, %v406_v3 }
  0xf4   :  { %v694_v19 = vmax.f32 %v412_v6, 0.0 }
  0xf5   :  { %v693_v14 = vmax.f32 %v407_v8, 0.0  ;;  %v755_v15 = vadd.f32 %v754_v5, %v692_v2  ;;  %v1166_v16 = vpop.f32.mrb[10].mxu0  ;;  %v1788_v24 = vpop.f32.mrb[10].mxu1 }
  0xf6   :  { %v416_v18 = vpop.f32.mrb[11].mxu0  ;;  %v422_v22 = vadd.f32 %v1166_v16, %v1727_v20  ;;  %v1790_v26 = vpop.f32.mrb[11].mxu1 }
  0xf7   :  { %v756_v21 = vadd.f32 %v755_v15, %v693_v14  ;;  %v417_v23 = vadd.f32 %v1727_v20, %v416_v18 }
  0xf8   :  { %v696_v7 = vmax.f32 %v422_v22, 0.0 }
  0xf9   :  { %v695_v28 = vmax.f32 %v417_v23, 0.0  ;;  %v757_v29 = vadd.f32 %v756_v21, %v694_v19  ;;  %v1169_v30 = vpop.f32.mrb[12].mxu0  ;;  %v1794_v37 = vpop.f32.mrb[12].mxu1 }
  0xfa   :  { %v426_v31 = vpop.f32.mrb[13].mxu0  ;;  %v432_v33 = vadd.f32 %v1169_v30, %v1727_v20  ;;  %v1796_v38 = vpop.f32.mrb[13].mxu1 }
  0xfb   :  { %v758_v32 = vadd.f32 %v757_v29, %v695_v28  ;;  %v427_v36 = vadd.f32 %v1727_v20, %v426_v31 }
  0xfc   :  { %v698_v43 = vmax.f32 %v432_v33, 0.0 }
  0xfd   :  { %v697_v39 = vmax.f32 %v427_v36, 0.0  ;;  %v759_v40 = vadd.f32 %v758_v32, %v696_v7  ;;  %v1172_v41 = vpop.f32.mrb[14].mxu0  ;;  %v1800_v49 = vpop.f32.mrb[14].mxu1 }
  0xfe   :  { %v436_v42 = vpop.f32.mrb[15].mxu0  ;;  %v442_v45 = vadd.f32 %v1172_v41, %v1727_v20  ;;  %v1802_v50 = vpop.f32.mrb[15].mxu1 }
  0xff   :  { %v760_v44 = vadd.f32 %v759_v40, %v697_v39  ;;  %v437_v48 = vadd.f32 %v1727_v20, %v436_v42 }
 0x100   :  { %v700_v55 = vmax.f32 %v442_v45, 0.0 }
 0x101   :  { %v699_v51 = vmax.f32 %v437_v48, 0.0  ;;  %v761_v52 = vadd.f32 %v760_v44, %v698_v43  ;;  %v1175_v53 = vpop.f32.mrb[16].mxu0  ;;  %v1806_v61 = vpop.f32.mrb[16].mxu1 }
 0x102   :  { %v446_v54 = vpop.f32.mrb[17].mxu0  ;;  %v452_v57 = vadd.f32 %v1175_v53, %v1727_v20  ;;  %v1808_v62 = vpop.f32.mrb[17].mxu1 }
 0x103   :  { %v762_v56 = vadd.f32 %v761_v52, %v699_v51  ;;  %v447_v58 = vadd.f32 %v1727_v20, %v446_v54 }
 0x104   :  { %v702_v3 = vmax.f32 %v452_v57, 0.0 }
 0x105   :  { %v701_v63 = vmax.f32 %v447_v58, 0.0  ;;  %v763_v0 = vadd.f32 %v762_v56, %v700_v55  ;;  %v1178_v1 = vpop.f32.mrb[18].mxu0  ;;  %v1812_v8 = vpop.f32.mrb[18].mxu1 }
 0x106   :  { %v456_v2 = vpop.f32.mrb[19].mxu0  ;;  %v462_v5 = vadd.f32 %v1178_v1, %v1727_v20  ;;  %v1814_v10 = vpop.f32.mrb[19].mxu1 }
 0x107   :  { %v764_v4 = vadd.f32 %v763_v0, %v701_v63  ;;  %v457_v6 = vadd.f32 %v1727_v20, %v456_v2 }
 0x108   :  { %v704_v16 = vmax.f32 %v462_v5, 0.0 }
 0x109   :  { %v703_v11 = vmax.f32 %v457_v6, 0.0  ;;  %v765_v13 = vadd.f32 %v764_v4, %v702_v3  ;;  %v1181_v14 = vpop.f32.mrb[20].mxu0  ;;  %v1818_v21 = vpop.f32.mrb[20].mxu1 }
 0x10a   :  { %v466_v15 = vpop.f32.mrb[21].mxu0  ;;  %v472_v18 = vadd.f32 %v1181_v14, %v1727_v20  ;;  %v1820_v22 = vpop.f32.mrb[21].mxu1 }
 0x10b   :  { %v766_v17 = vadd.f32 %v765_v13, %v703_v11  ;;  %v467_v19 = vadd.f32 %v1727_v20, %v466_v15 }
 0x10c   :  { %v706_v31 = vmax.f32 %v472_v18, 0.0 }
 0x10d   :  { %v705_v23 = vmax.f32 %v467_v19, 0.0  ;;  %v767_v28 = vadd.f32 %v766_v17, %v704_v16  ;;  %v1184_v29 = vpop.f32.mrb[22].mxu0  ;;  %v1824_v36 = vpop.f32.mrb[22].mxu1 }
 0x10e   :  { %v476_v30 = vpop.f32.mrb[23].mxu0  ;;  %v482_v32 = vadd.f32 %v1184_v29, %v1727_v20  ;;  %v1826_v39 = vpop.f32.mrb[23].mxu1 }
 0x10f   :  { %v768_v7 = vadd.f32 %v767_v28, %v705_v23  ;;  %v477_v33 = vadd.f32 %v1727_v20, %v476_v30 }
 0x110   :  { %v708_v44 = vmax.f32 %v482_v32, 0.0 }
 0x111   :  { %v707_v40 = vmax.f32 %v477_v33, 0.0  ;;  %v769_v41 = vadd.f32 %v768_v7, %v706_v31  ;;  %v1187_v42 = vpop.f32.mrb[24].mxu0  ;;  %v1830_v52 = vpop.f32.mrb[24].mxu1 }
 0x112   :  { %v486_v43 = vpop.f32.mrb[25].mxu0  ;;  %v492_v48 = vadd.f32 %v1187_v42, %v1727_v20  ;;  %v1832_v53 = vpop.f32.mrb[25].mxu1  ;;  %v537_v42 = vadd.f32 %v1727_v20, %v1733_v27 }
 0x113   :  { %v770_v45 = vadd.f32 %v769_v41, %v707_v40  ;;  %v487_v51 = vadd.f32 %v1727_v20, %v486_v43 }
 0x114   :  { %v710_v58 = vmax.f32 %v492_v48, 0.0 }
 0x115   :  { %v709_v54 = vmax.f32 %v487_v51, 0.0  ;;  %v771_v55 = vadd.f32 %v770_v45, %v708_v44  ;;  %v1190_v56 = vpop.f32.mrb[26].mxu0  ;;  %v1836_v2 = vpop.f32.mrb[26].mxu1 }
 0x116   :  { %v496_v57 = vpop.f32.mrb[27].mxu0  ;;  %v502_v0 = vadd.f32 %v1190_v56, %v1727_v20  ;;  %v1838_v3 = vpop.f32.mrb[27].mxu1 }
 0x117   :  { %v772_v63 = vadd.f32 %v771_v55, %v709_v54  ;;  %v497_v1 = vadd.f32 %v1727_v20, %v496_v57  ;;  %v542_v55 = vadd.f32 %v1731_v25, %v1727_v20 }
 0x118   :  { %v712_v13 = vmax.f32 %v502_v0, 0.0 }
 0x119   :  { %v711_v4 = vmax.f32 %v497_v1, 0.0  ;;  %v773_v5 = vadd.f32 %v772_v63, %v710_v58  ;;  %v1193_v6 = vpop.f32.mrb[28].mxu0  ;;  %v1842_v17 = vpop.f32.mrb[28].mxu1  ;;  %v719_v58 = vmax.f32 %v537_v42, 0.0  ;;  %v547_v63 = vadd.f32 %v1727_v20, %v1739_v35 }
 0x11a   :  { %v506_v11 = vpop.f32.mrb[29].mxu0  ;;  %v512_v15 = vadd.f32 %v1193_v6, %v1727_v20  ;;  %v1844_v18 = vpop.f32.mrb[29].mxu1  ;;  %v720_v27 = vmax.f32 %v542_v55, 0.0 }
 0x11b   :  { %v774_v14 = vadd.f32 %v773_v5, %v711_v4  ;;  %v507_v16 = vadd.f32 %v1727_v20, %v506_v11  ;;  %v552_v4 = vadd.f32 %v1737_v34, %v1727_v20  ;;  %v721_v11 = vmax.f32 %v547_v63, 0.0 }
 0x11c   :  { %v714_v30 = vmax.f32 %v512_v15, 0.0 }
 0x11d   :  { %v713_v19 = vmax.f32 %v507_v16, 0.0  ;;  %v775_v23 = vadd.f32 %v774_v14, %v712_v13  ;;  %v1196_v28 = vpop.f32.mrb[30].mxu0  ;;  %v557_v13 = vadd.f32 %v1727_v20, %v1751_v47  ;;  %v722_v15 = vmax.f32 %v552_v4, 0.0 }
 0x11e   :  { %v516_v29 = vpop.f32.mrb[31].mxu0  ;;  %v522_v7 = vadd.f32 %v1196_v28, %v1727_v20  ;;  %v562_v16 = vadd.f32 %v1749_v46, %v1727_v20  ;;  %v567_v28 = vadd.f32 %v1727_v20, %v1764_v60 }
 0x11f   :  { %v776_v31 = vadd.f32 %v775_v23, %v713_v19  ;;  %v517_v32 = vadd.f32 %v1727_v20, %v516_v29  ;;  %v723_v23 = vmax.f32 %v557_v13, 0.0 }
 0x120   :  { %v716_v45 = vmax.f32 %v522_v7, 0.0 }
 0x121   :  { %v715_v33 = vmax.f32 %v517_v32, 0.0  ;;  %v777_v40 = vadd.f32 %v776_v31, %v714_v30  ;;  %v1199_v41 = vpop.f32.mrb[32].mxu0  ;;  %v724_v30 = vmax.f32 %v562_v16, 0.0  ;;  %v572_v31 = vadd.f32 %v1762_v59, %v1727_v20 }
 0x122   :  { %v532_v43 = vadd.f32 %v1199_v41, %v1727_v20  ;;  %v526_v44 = vpop.f32.mrb[33].mxu0  ;;  %v725_v32 = vmax.f32 %v567_v28, 0.0  ;;  %v582_v41 = vadd.f32 %v1775_v9, %v1727_v20  ;;  %v602_v9 = vadd.f32 %v1794_v37, %v1727_v20 }
 0x123   :  { %v778_v48 = vadd.f32 %v777_v40, %v715_v33  ;;  %v527_v51 = vadd.f32 %v1727_v20, %v526_v44  ;;  %v577_v33 = vadd.f32 %v1727_v20, %v1783_v12  ;;  %v726_v42 = vmax.f32 %v572_v31, 0.0 }
 0x124   :  { %v718_v54 = vmax.f32 %v532_v43, 0.0  ;;  %v587_v44 = vadd.f32 %v1727_v20, %v1790_v26  ;;  %v728_v59 = vmax.f32 %v582_v41, 0.0  ;;  %v597_v12 = vadd.f32 %v1727_v20, %v1796_v38 }
 0x125   :  { %v779_v56 = vadd.f32 %v778_v48, %v716_v45  ;;  %v717_v57 = vmax.f32 %v527_v51, 0.0  ;;  %v727_v43 = vmax.f32 %v577_v33, 0.0  ;;  %v592_v51 = vadd.f32 %v1788_v24, %v1727_v20 }
 0x126   :  { %v607_v26 = vadd.f32 %v1727_v20, %v1802_v50  ;;  %v612_v24 = vadd.f32 %v1800_v49, %v1727_v20  ;;  %v617_v38 = vadd.f32 %v1727_v20, %v1808_v62  ;;  %v622_v37 = vadd.f32 %v1806_v61, %v1727_v20 }
 0x127   :  { %v780_v0 = vrot.slane %v779_v56, 4  ;;  %v788_v1 = vadd.f32 %v718_v54, %v717_v57  ;;  %v729_v54 = vmax.f32 %v587_v44, 0.0  ;;  %v627_v50 = vadd.f32 %v1727_v20, %v1814_v10 }
 0x128   :  { %v632_v49 = vadd.f32 %v1812_v8, %v1727_v20  ;;  %v637_v62 = vadd.f32 %v1727_v20, %v1820_v22  ;;  %v642_v61 = vadd.f32 %v1818_v21, %v1727_v20  ;;  %v647_v10 = vadd.f32 %v1727_v20, %v1826_v39 }
 0x129   :  { %v781_v5 = vadd.f32 %v780_v0, %v779_v56  ;;  %v789_v6 = vadd.f32 %v788_v1, %v719_v58  ;;  %v730_v56 = vmax.f32 %v592_v51, 0.0  ;;  %v731_v58 = vmax.f32 %v597_v12, 0.0 }
 0x12a   :  { %v732_v0 = vmax.f32 %v602_v9, 0.0  ;;  %v652_v8 = vadd.f32 %v1824_v36, %v1727_v20  ;;  %v657_v22 = vadd.f32 %v1727_v20, %v1832_v53  ;;  %v662_v21 = vadd.f32 %v1830_v52, %v1727_v20 }
 0x12b   :  { %v782_v14 = vrot.slane %v781_v5, 2  ;;  %v790_v25 = vadd.f32 %v789_v6, %v720_v27  ;;  %v733_v27 = vmax.f32 %v607_v26, 0.0  ;;  %v667_v39 = vadd.f32 %v1727_v20, %v1838_v3 }
 0x12c   :  { %v672_v36 = vadd.f32 %v1836_v2, %v1727_v20  ;;  %v677_v53 = vadd.f32 %v1727_v20, %v1844_v18  ;;  %v682_v52 = vadd.f32 %v1842_v17, %v1727_v20  ;;  %v1052_v20 = vld [vmem:[%s1949_s5] ss:$0 sm:$0xff] }
 0x12d   :  { %v783_v19 = vadd.f32 %v782_v14, %v781_v5  ;;  %v791_v35 = vadd.f32 %v790_v25, %v721_v11  ;;  %v734_v5 = vmax.f32 %v612_v24, 0.0  ;;  %v735_v11 = vmax.f32 %v617_v38, 0.0  ;;  %v939_v24 = vld [vmem:[%s1944_s0] sm:$0x3]  ;;  %s1382_s0 = smov [#allocation5]  }
 0x12e   :  { %v736_v14 = vmax.f32 %v622_v37, 0.0  ;;  %v745_v41 = vmax.f32 %v667_v39, 0.0  ;;  %v747_v44 = vmax.f32 %v677_v53, 0.0  ;;  %s974_s5 = sshll.u32 %s1382_s0, 4  ;;  %s975_s5 = int_to_ptr.vmem [resolvable:$true] %s974_s5 }
 0x12f   :  { %v784_v29 = vrot.slane %v783_v19, 1  ;;  %v792_v34 = vadd.f32 %v791_v35, %v722_v15  ;;  %v737_v15 = vmax.f32 %v627_v50, 0.0  ;;  %s1330_s28 = scalar_lea.vmem %s975_s5, 32  ;;  %p1335_p1 = scmp.lt.s32.totalorder %s975_s5, %s975_s5 }
 0x130   :  { %p1331_p0 = scmp.ne.s32.totalorder %s975_s5, %s1330_s28  ;;  %p1336_p2 = scmp.lt.s32.totalorder %s1330_s28, %s1330_s28 }
 0x131   :  { %v785_v7 = vadd.f32 %v784_v29, %v783_v19  ;;  %v793_v47 = vadd.f32 %v792_v34, %v723_v23  ;;  %v738_v19 = vmax.f32 %v632_v49, 0.0  ;;  %v739_v23 = vmax.f32 %v637_v62, 0.0 }
 0x132   :  { %v740_v29 = vmax.f32 %v642_v61, 0.0  ;;  %p1337_p3 = por %p1336_p2, %p1335_p1 }
 0x133   :  { %v786_v40 = vmul.f32 0.00390625, %v785_v7  ;;  %v794_v46 = vadd.f32 %v793_v47, %v724_v30  ;;  %v741_v30 = vmax.f32 %v647_v10, 0.0  ;;  %v742_v7 = vmax.f32 %v652_v8, 0.0 }
 0x134   :  { %p1338_p4 = pnand %p1337_p3, %p1331_p0 }
 0x135   :  { %787 = vst [vmem:[#allocation2] sm:$0x1] %v786_v40  ;;  %v795_v60 = vadd.f32 %v794_v46, %v725_v32  ;;  %v743_v32 = vmax.f32 %v657_v22, 0.0  ;;  %v744_v40 = vmax.f32 %v662_v21, 0.0 }
 0x137   :  { %v796_v45 = vadd.f32 %v795_v60, %v726_v42  ;;  %v746_v60 = vmax.f32 %v672_v36, 0.0 }
 0x139   :  { %v797_v48 = vadd.f32 %v796_v45, %v727_v43 }
 0x13b   :  { %v798_v55 = vadd.f32 %v797_v48, %v728_v59  ;;  %v748_v59 = vmax.f32 %v682_v52, 0.0 }
 0x13d   :  { %v799_v57 = vadd.f32 %v798_v55, %v729_v54 }
 0x13f   :  { %v800_v63 = vadd.f32 %v799_v57, %v730_v56  ;;  %v921_v57 = vlaneseq }
 0x141   :  { %v801_v1 = vadd.f32 %v800_v63, %v731_v58  ;;  %v922_v58 = vand.u32 127, %v921_v57 }
 0x143   :  { %v802_v4 = vadd.f32 %v801_v1, %v732_v0  ;;  %vm923_vm3 = vcmp.lt.s32.totalorder %v922_v58, 10 }
 0x145   :  { %v803_v6 = vadd.f32 %v802_v4, %v733_v27  ;;  %v1381_v27 = vmov 0  }
 0x146   :  { %1324 = vset.pattern.permute.xlu1 %v1381_v27  ;;  %1325 = vset.pattern.permute.xlu0 %v1381_v27 }
 0x147   :  { %v804_v13 = vadd.f32 %v803_v6, %v734_v5  ;;  %941 = vperm.xlu1 %1324, %v939_v24  }
 0x149   :  { %v805_v25 = vadd.f32 %v804_v13, %v735_v11 }
 0x14b   :  { %v806_v16 = vadd.f32 %v805_v25, %v736_v14 }
 0x14d   :  { %v807_v35 = vadd.f32 %v806_v16, %v737_v15 }
 0x14f   :  { %v808_v28 = vadd.f32 %v807_v35, %v738_v19 }
 0x151   :  { %v809_v34 = vadd.f32 %v808_v28, %v739_v23 }
 0x153   :  { %v810_v31 = vadd.f32 %v809_v34, %v740_v29 }
 0x155   :  { %v811_v47 = vadd.f32 %v810_v31, %v741_v30 }
 0x157   :  { %v812_v33 = vadd.f32 %v811_v47, %v742_v7 }
 0x159   :  { %v813_v46 = vadd.f32 %v812_v33, %v743_v32 }
 0x15b   :  { %v814_v42 = vadd.f32 %v813_v46, %v744_v40 }
 0x15d   :  { %v815_v43 = vadd.f32 %v814_v42, %v745_v41 }
 0x15f   :  { %v816_v45 = vadd.f32 %v815_v43, %v746_v60 }
 0x161   :  { %v817_v3 = vadd.f32 %v816_v45, %v747_v44 }
 0x163   :  { %v818_v48 = vadd.f32 %v817_v3, %v748_v59 }
 0x165   :  { %v819_v51 = vrot.slane %v818_v48, 4 }
 0x167   :  { %v820_v54 = vadd.f32 %v819_v51, %v818_v48 }
 0x169   :  { %v821_v12 = vrot.slane %v820_v54, 2 }
 0x16b   :  { %v822_v55 = vadd.f32 %v821_v12, %v820_v54 }
 0x16d   :  { %v823_v2 = vrot.slane %v822_v55, 1 }
 0x16f   :  { %v824_v9 = vadd.f32 %v823_v2, %v822_v55 }
 0x171   :  { %v825_v56 = vmul.f32 0.00390625, %v824_v9 }
 0x173   :  { %826 = vst [vmem:[#allocation2 + $0x1] sm:$0x1] %v825_v56 }
 0x17a   :  { %v827_v18 = vld [vmem:[#allocation2] sm:$0x3] }
 0x17b   :  { %1278 = vmatmul.mubr.f32.vlgmr.msra.gmra.mrb[30].mxu1 %v827_v18 }
 0x1c6   :  { %v942_v50 = vpop.permute.xlu1 %941 }
 0x1c7   :  { %vm943_vm5 = vcmp.eq.s32.totalorder %v922_v58, %v942_v50 }
 0x24e   :  { %v917_v17 = vpop.f32.mrb[30].mxu1 }
 0x24f   :  { %v918_v26 = vadd.f32 %v1052_v20, %v917_v17  ;;  %v1279_v63 = vpop.f32.mrb[31].mxu1 }
 0x251   :  { %v924_v0 = vsel %vm923_vm3, %v918_v26, -1e+30 }
 0x252   :  { %v927_v1 = vsel %vm926_vm4, %v924_v0, -inf  ;;  %925 = vst [vmem:[#allocation5] sm:$0x3] %v924_v0 }
 0x253   :  { %928 = vmax.xlane.f32.xlu0 %v927_v1 }
 0x2e0   :  { %v929_v38 = vpop.xlane.xlu0 %928 }
 0x2e1   :  { %v930_v4 = vsub.f32 %v924_v0, %v929_v38 }
 0x2e3   :  { %v931_v37 = vmul.f32 1.442695, %v930_v4 }
 0x2e5   :  { %1326 = vpow2.f32 %v931_v37 }
 0x2ef   :  { %v1327_v5 = vpop.eup %1326 }
 0x2f0   :  { %v933_v6 = vsel %vm926_vm4, %v1327_v5, 0.0 }
 0x2f1   :  { %934 = vadd.xlane.f32.xlu0 %v933_v6 }
 0x37e   :  { %v935_v11 = vpop.xlane.xlu0 %934 }
 0x37f   :  { %1328 = vlog2.f32 %v935_v11 }
 0x389   :  { %v1329_v13 = vpop.eup %1328 }
 0x38a   :  { %v937_v14 = vmul.f32 0.6931472, %v1329_v13 }
 0x38c   :  { %v938_v25 = vsub.f32 %v930_v4, %v937_v14 }
 0x38e   :  { %v944_v49 = vsel %vm943_vm5, %v938_v25, 0.0 }
 0x38f   :  { %v945_v15 = vsel %vm926_vm4, %v944_v49, 0.0 }
 0x390   :  { %946 = vadd.xlane.f32.xlu1 %v945_v15 }
 0x391   :  { %1341 = shalt.err (!%p1338_p4)
}
 0x392   :  { %s1342_s8 = scalar_lea.hbm %s1951_s7, 32 }
 0x393   :  { %p1343_p5 = scmp.ne.s32.totalorder %s1951_s7, %s1342_s8  ;;  %p1346_p6 = scmp.lt.u32.totalorder %s1342_s8, %s1951_s7 }
 0x395   :  { %p1348_p7 = pnand %p1346_p6, %p1343_p5 }
 0x397   :  { %1351 = shalt.err (!%p1348_p7)
}
 0x398   :  { %977 = dma.vmem_to_hbm [thread:$0]  %s975_s5, 32, %s1951_s7, [#allocation6]  }
 0x399   :  { %s1383_s14 = smov [#allocation3]  }
 0x39a   :  { %s964_s15 = sshll.u32 %s1383_s14, 4  ;;  %s965_s15 = int_to_ptr.vmem [resolvable:$true] %s964_s15 }
 0x39b   :  { %s1352_s16 = scalar_lea.vmem %s965_s15, 16  ;;  %s1356_s17 = scalar_lea.vmem %s965_s15, 32 }
 0x39c   :  { %p1353_p8 = scmp.ne.s32.totalorder %s965_s15, %s1352_s16  ;;  %p1357_p9 = scmp.lt.s32.totalorder %s965_s15, %s965_s15 }
 0x39d   :  { %p1358_p10 = scmp.lt.s32.totalorder %s1356_s17, %s1352_s16 }
 0x39f   :  { %p1359_p11 = por %p1358_p10, %p1357_p9 }
 0x3a1   :  { %p1360_p12 = pnand %p1359_p11, %p1353_p8 }
 0x41d   :  { %v947_v62 = vpop.xlane.xlu1 %946 }
 0x41e   :  { %v948_v16 = vsub.f32 0.0, %v947_v62 }
 0x420   :  { %v949_v61 = vsel %vm926_vm4, %v948_v16, 0.0 }
 0x421   :  { %v950_v19 = vrot.slane %v949_v61, 4 }
 0x423   :  { %v951_v35 = vadd.f32 %v950_v19, %v949_v61 }
 0x425   :  { %v952_v23 = vrot.slane %v951_v35, 2 }
 0x427   :  { %v953_v10 = vadd.f32 %v952_v23, %v951_v35 }
 0x429   :  { %v954_v28 = vrot.slane %v953_v10, 1 }
 0x42b   :  { %v955_v29 = vadd.f32 %v954_v28, %v953_v10 }
 0x42d   :  { %v956_v34 = vmul.f32 0.5, %v955_v29 }
 0x42f   :  { %957 = vst [vmem:[#allocation3] sm:$0x1] %v956_v34 }
 0x430   :  { %1363 = shalt.err (!%p1360_p12)
}
 0x431   :  { %s1364_s2 = scalar_lea.hbm %s1950_s6, 16 }
 0x432   :  { %p1365_p13 = scmp.ne.s32.totalorder %s1950_s6, %s1364_s2  ;;  %p1368_p0 = scmp.lt.u32.totalorder %s1364_s2, %s1950_s6 }
 0x434   :  { %p1370_p1 = pnand %p1368_p0, %p1365_p13 }
 0x436   :  { %1373 = shalt.err (!%p1370_p1)
}
 0x437   :  { %967 = dma.vmem_to_hbm [thread:$0]  %s965_s15, 16, %s1950_s6, [#allocation4]  }
 0x438   :  { %1374 = dma.done.wait [#allocation4], 16  }
 0x439   :  { %1375 = vsyncadd [#allocation4], 4294967280 }
 0x43a   :  { %1376 = dma.done.wait [#allocation6], 32  }
 0x43b   :  { %1377 = vsyncadd [#allocation6], 4294967264 }
 0x43c   :  { %984 = vsyncpa [#allocation4], 1 }
 0x43d   :  { %985 = vsyncpa [#allocation6], 1 }

</bundles_post_ra>
